<compile_context>
chip_gen: v5e
topology: v5e:2x2
jax: 0.10.0
libtpu: 0.0.40
codegen_flags: <defaults>
</compile_context>

<pallas_src>
import functools

import numpy as np

import jax
import jax.numpy as jnp
from jax.experimental import pallas as pl
from jax.experimental.pallas import tpu as pltpu

LANES = 128
SUBLANES = 8
MAX_BLOCK_ROWS = 1024  # (1024, 128) f32 = 512 KiB per pipeline buffer


def _cdiv(a, b):
    return -(-a // b)


def _round_up(x, m):
    return _cdiv(x, m) * m


def _fused_ssq_kernel(z_ref, zh_ref, s_ref, out_ref):
    """Accumulates sum(scale * (z - z_hat)^2) per parallel chunk.

    out_ref is a (1, 8, 128) partial-sum block, resident across the inner
    (arbitrary / reduction) grid axis.  The final cross-lane collapse is done
    once in the wrapper, keeping the hot loop pure VPU work.
    """
    i = pl.program_id(1)

    @pl.when(i == 0)
    def _():
        out_ref[...] = jnp.zeros_like(out_ref)

    d = z_ref[...].astype(jnp.float32) - zh_ref[...].astype(jnp.float32)
    sd2 = d * d * s_ref[...]                     # (BR,128) * (BR,1) broadcast
    br = sd2.shape[0]
    # Collapse the tile to one vreg: elementwise adds of BR/8 vregs (no XLU).
    part = sd2.reshape(br // SUBLANES, SUBLANES, LANES).sum(axis=0)
    out_ref[...] += part[None, :, :]


@functools.partial(jax.jit, static_argnums=(3, 4, 5))
def _fused_loss(zs, z_hats, scale2d, n_chunks, block_rows, inner):
    # Build the lane-dense slab inside jit so pads/concat fuse into one pass.
    z_rows, zh_rows = [], []
    for z, zh in zip(zs, z_hats):
        n = z.size
        rows = _cdiv(n, LANES)
        pad = rows * LANES - n
        zf, zhf = z.reshape(-1), zh.reshape(-1)
        if pad:
            zf = jnp.pad(zf, (0, pad))
            zhf = jnp.pad(zhf, (0, pad))
        z_rows.append(zf.reshape(rows, LANES))
        zh_rows.append(zhf.reshape(rows, LANES))

    padded_rows = n_chunks * block_rows * inner
    total_rows = sum(a.shape[0] for a in z_rows)
    extra = padded_rows - total_rows
    if extra:
        dt = jnp.result_type(*[a.dtype for a in z_rows])
        z_rows.append(jnp.zeros((extra, LANES), dt))
        zh_rows.append(jnp.zeros((extra, LANES), dt))

    z2d = jnp.concatenate(z_rows, axis=0) if len(z_rows) > 1 else z_rows[0]
    zh2d = jnp.concatenate(zh_rows, axis=0) if len(zh_rows) > 1 else zh_rows[0]

    row_map = lambda c, i: (c * inner + i, 0)

    partials = pl.pallas_call(
        _fused_ssq_kernel,
        out_shape=jax.ShapeDtypeStruct((n_chunks, SUBLANES, LANES), jnp.float32),
        grid_spec=pltpu.PrefetchScalarGridSpec(
            num_scalar_prefetch=0,
            grid=(n_chunks, inner),
            in_specs=[
                pl.BlockSpec((block_rows, LANES), row_map),
                pl.BlockSpec((block_rows, LANES), row_map),
                pl.BlockSpec((block_rows, 1), row_map),
            ],
            out_specs=pl.BlockSpec((1, SUBLANES, LANES), lambda c, i: (c, 0, 0)),
        ),
        compiler_params=pltpu.CompilerParams(
            dimension_semantics=("parallel", "arbitrary"),
        ),
    )(z2d, zh2d, scale2d)

    return jnp.sum(partials)


def reconstruction_loss(zs, z_hats, weights):
    """JAX/Pallas equivalent of ReconstructionLoss.forward."""
    assert len(zs) == len(z_hats), "Lengths not equal for reconstruction"
    assert len(weights) == len(zs), "Need one weight per ladder level"

    levels = [(z, zh, w) for z, zh, w in zip(zs, z_hats, weights) if z.size]
    if not levels:
        return jnp.float32(0.0)

    # Static per-level metadata (shapes / weights are compile-time constants).
    rows_per_level, scale_chunks = [], []
    for z, zh, w in levels:
        assert z.shape == zh.shape, "z / z_hat shape mismatch"
        numel = int(z.size)
        c = int(zh.shape[1])
        rows = _cdiv(numel, LANES)
        rows_per_level.append(rows)
        scale_chunks.append(np.full((rows,), float(w) / (numel * c), np.float32))

    total_rows = sum(rows_per_level)
    if total_rows <= MAX_BLOCK_ROWS:
        n_chunks, block_rows = 1, _round_up(total_rows, SUBLANES)
    else:
        n_chunks = 2  # v7x megacore: shard the reduction across both TCs
        block_rows = min(MAX_BLOCK_ROWS,
                         _round_up(_cdiv(total_rows, n_chunks), SUBLANES))
    padded_rows = _round_up(total_rows, n_chunks * block_rows)
    inner = padded_rows // (n_chunks * block_rows)

    scale = np.zeros((padded_rows, 1), np.float32)
    scale[:total_rows, 0] = np.concatenate(scale_chunks)

    zs_t = tuple(z for z, _, _ in levels)
    zhs_t = tuple(zh for _, zh, _ in levels)
    return _fused_loss(zs_t, zhs_t, jnp.asarray(scale),
                       n_chunks, block_rows, inner)


def reconstruction_loss_ref(zs, z_hats, weights):
    """Pure-JAX reference for validation."""
    loss = jnp.float32(0.0)
    for z, z_hat, weight in zip(zs, z_hats, weights):
        loss = loss + weight * jnp.mean((z - z_hat) ** 2) / z_hat.shape[1]
    return loss


if __name__ == "__main__":
    key = jax.random.PRNGKey(0)
    k1, k2, k3, k4, k5, k6, k7, k8 = jax.random.split(key, 8)

    # Small laddered feature maps, NCHW like the PyTorch module would see.
    zs = [
        jax.random.normal(k1, (2, 4, 16, 16), dtype=jnp.float32),
        jax.random.normal(k2, (2, 8, 8, 8), dtype=jnp.float32),
        jax.random.normal(k3, (2, 32), dtype=jnp.float32),
    ]
    z_hats = [
        jax.random.normal(k4, (2, 4, 16, 16), dtype=jnp.float32),
        jax.random.normal(k5, (2, 8, 8, 8), dtype=jnp.float32),
        jax.random.normal(k6, (2, 32), dtype=jnp.float32),
    ]
    weights = [1.0, 0.5, 0.1]  # deterministic "parameters" of the module

    loss = jax.block_until_ready(reconstruction_loss(zs, z_hats, weights))
    ref = jax.block_until_ready(reconstruction_loss_ref(zs, z_hats, weights))
    assert jnp.allclose(loss, ref, rtol=1e-5, atol=1e-6), (loss, ref)

    # Second check: a level large enough to exercise the multi-block /
    # 2-chunk ("parallel") path.
    zs2 = zs + [jax.random.normal(k7, (2, 8, 96, 96), dtype=jnp.float32)]
    z_hats2 = z_hats + [jax.random.normal(k8, (2, 8, 96, 96), dtype=jnp.float32)]
    weights2 = weights + [0.25]
    loss2 = jax.block_until_ready(reconstruction_loss(zs2, z_hats2, weights2))
    ref2 = jax.block_until_ready(reconstruction_loss_ref(zs2, z_hats2, weights2))
    assert jnp.allclose(loss2, ref2, rtol=1e-5, atol=1e-6), (loss2, ref2)

    print("KERNEL_OK")
</pallas_src>

<mosaic_0001>
module attributes {stable_mosaic.version = 11 : i64} {
  func.func @_fused_ssq_kernel(%arg0: i32, %arg1: i32, %arg2: memref<32x128xf32, #tpu.memory_space<vmem>>, %arg3: memref<32x128xf32, #tpu.memory_space<vmem>>, %arg4: memref<32x1xf32, #tpu.memory_space<vmem>>, %arg5: memref<1x8x128xf32, #tpu.memory_space<vmem>>) attributes {dimension_semantics = [#tpu.dimension_semantics<parallel>, #tpu.dimension_semantics<arbitrary>], iteration_bounds = array<i64: 1, 1>, scalar_prefetch = 0 : i64, scratch_operands = 0 : i64, tpu.core_type = #tpu.core_type<tc>, window_params = [{transform_indices = @transform_0, window_bounds = array<i64: 32, 128>}, {transform_indices = @transform_1, window_bounds = array<i64: 32, 128>}, {transform_indices = @transform_2, window_bounds = array<i64: 32, 1>}, {transform_indices = @transform_3, window_bounds = array<i64: 1, 8, 128>}]} {
    %c0_i32 = arith.constant 0 : i32
    %0 = arith.cmpi eq, %arg1, %c0_i32 : i32
    %1 = arith.extui %0 : i1 to i32
    %c0_i32_0 = arith.constant 0 : i32
    %2 = arith.cmpi ne, %1, %c0_i32_0 : i32
    scf.if %2 {
      %cst_12 = arith.constant 0.000000e+00 : f32
      %16 = vector.broadcast %cst_12 : f32 to vector<1x8x128xf32>
      %c0_13 = arith.constant 0 : index
      %c0_14 = arith.constant 0 : index
      %c0_15 = arith.constant 0 : index
      %17 = vector.load %arg5[%c0_13, %c0_14, %c0_15] : memref<1x8x128xf32, #tpu.memory_space<vmem>>, vector<1x8x128xf32>
      tpu.vector_store %arg5[%c0_13, %c0_14, %c0_15], %16 {strides = array<i32>} : memref<1x8x128xf32, #tpu.memory_space<vmem>>, vector<1x8x128xf32>,
    } else {
    }
    %c0 = arith.constant 0 : index
    %c0_1 = arith.constant 0 : index
    %3 = vector.load %arg2[%c0, %c0_1] : memref<32x128xf32, #tpu.memory_space<vmem>>, vector<32x128xf32>
    %c0_2 = arith.constant 0 : index
    %c0_3 = arith.constant 0 : index
    %4 = vector.load %arg3[%c0_2, %c0_3] : memref<32x128xf32, #tpu.memory_space<vmem>>, vector<32x128xf32>
    %5 = arith.subf %3, %4 : vector<32x128xf32>
    %6 = arith.mulf %5, %5 : vector<32x128xf32>
    %c0_4 = arith.constant 0 : index
    %c0_5 = arith.constant 0 : index
    %7 = vector.load %arg4[%c0_4, %c0_5] : memref<32x1xf32, #tpu.memory_space<vmem>>, vector<32x1xf32>
    %8 = vector.broadcast %7 : vector<32x1xf32> to vector<32x128xf32>
    %9 = arith.mulf %6, %8 : vector<32x128xf32>
    %10 = vector.shape_cast %9 : vector<32x128xf32> to vector<4x8x128xf32>
    %cst = arith.constant dense<0.000000e+00> : vector<8x128xf32>
    %11 = vector.multi_reduction <add>, %10, %cst [0] : vector<4x8x128xf32> to vector<8x128xf32>
    %c0_6 = arith.constant 0 : index
    %c0_7 = arith.constant 0 : index
    %c0_8 = arith.constant 0 : index
    %12 = vector.load %arg5[%c0_6, %c0_7, %c0_8] : memref<1x8x128xf32, #tpu.memory_space<vmem>>, vector<1x8x128xf32>
    %13 = vector.shape_cast %11 : vector<8x128xf32> to vector<1x8x128xf32>
    %14 = arith.addf %12, %13 : vector<1x8x128xf32>
    %c0_9 = arith.constant 0 : index
    %c0_10 = arith.constant 0 : index
    %c0_11 = arith.constant 0 : index
    %15 = vector.load %arg5[%c0_9, %c0_10, %c0_11] : memref<1x8x128xf32, #tpu.memory_space<vmem>>, vector<1x8x128xf32>
    tpu.vector_store %arg5[%c0_9, %c0_10, %c0_11], %14 {strides = array<i32>} : memref<1x8x128xf32, #tpu.memory_space<vmem>>, vector<1x8x128xf32>,
    return
  }
  func.func @transform_0(%arg0: i32, %arg1: i32) -> (i32, i32) {
    %c1_i32 = arith.constant 1 : i32
    %0 = arith.muli %arg0, %c1_i32 : i32
    %1 = arith.addi %0, %arg1 : i32
    %c0_i32 = arith.constant 0 : i32
    %c0_i32_0 = arith.constant 0 : i32
    return %1, %c0_i32 : i32, i32
  }
  func.func @transform_1(%arg0: i32, %arg1: i32) -> (i32, i32) {
    %c1_i32 = arith.constant 1 : i32
    %0 = arith.muli %arg0, %c1_i32 : i32
    %1 = arith.addi %0, %arg1 : i32
    %c0_i32 = arith.constant 0 : i32
    %c0_i32_0 = arith.constant 0 : i32
    return %1, %c0_i32 : i32, i32
  }
  func.func @transform_2(%arg0: i32, %arg1: i32) -> (i32, i32) {
    %c1_i32 = arith.constant 1 : i32
    %0 = arith.muli %arg0, %c1_i32 : i32
    %1 = arith.addi %0, %arg1 : i32
    %c0_i32 = arith.constant 0 : i32
    %c0_i32_0 = arith.constant 0 : i32
    return %1, %c0_i32 : i32, i32
  }
  func.func @transform_3(%arg0: i32, %arg1: i32) -> (i32, i32, i32) {
    %c0_i32 = arith.constant 0 : i32
    %c0_i32_0 = arith.constant 0 : i32
    %c0_i32_1 = arith.constant 0 : i32
    return %arg0, %c0_i32, %c0_i32_0 : i32, i32, i32
  }
}

</mosaic_0001>

<bundles_post_ra>
// kernel: _fused_loss.1
= control target key start
LH: loop header
LB: loop body
LE: loop exit
PB: predicated region body
PF: predicated region fallthrough
CT: control target
= control target key end

     0   :  { %v161_v0 = vmov 0   ;;  %s221_s2 = inlined_call_operand.vmem [shape: f32[32,1], index: 2, kind: input, shape index: {}]   ;;  %s222_s0 = inlined_call_operand.vmem [shape: f32[32,128], index: 0, kind: input, shape index: {}]   ;;  %s223_s1 = inlined_call_operand.vmem [shape: f32[32,128], index: 1, kind: input, shape index: {}]   ;;  %s224_s3 = inlined_call_operand.vmem [shape: f32[1,8,128], index: 3, kind: output, shape index: {}]  }
   0x1   :  { %160 = vset.pattern.permute.xlu1 %v161_v0  ;;  %159 = vset.pattern.permute.xlu0 %v161_v0  ;;  %v103_v1 = vld [vmem:[%s221_s2 + $0x10] sm:$0xff]  ;;  %v101_v2 = vld [vmem:[%s221_s2] sm:$0xff]  ;;  %v104_v3 = vld [vmem:[%s221_s2 + $0x18] sm:$0xff] }
   0x2   :  { %117 = vperm.xlu1 %160, %v103_v1   ;;  %107 = vperm.xlu0 %159, %v101_v2   ;;  %v102_v4 = vld [vmem:[%s221_s2 + $0x8] sm:$0xff]  ;;  %v85_v5 = vld [vmem:[%s222_s0] sm:$0xff]  ;;  %v87_v10 = vld [vmem:[%s222_s0 + $0x10] sm:$0xff] }
   0x3   :  { %v89_v6 = vld [vmem:[%s223_s1] sm:$0xff]  ;;  %v86_v7 = vld [vmem:[%s222_s0 + $0x8] sm:$0xff]  ;;  %v91_v11 = vld [vmem:[%s223_s1 + $0x10] sm:$0xff] }
   0x4   :  { %v90_v8 = vld [vmem:[%s223_s1 + $0x8] sm:$0xff]  ;;  %v93_v13 = vsub.f32 %v85_v5, %v89_v6  ;;  %v88_v15 = vld [vmem:[%s222_s0 + $0x18] sm:$0xff]  ;;  %v95_v17 = vsub.f32 %v87_v10, %v91_v11 }
   0x5   :  { %v94_v14 = vsub.f32 %v86_v7, %v90_v8  ;;  %v92_v16 = vld [vmem:[%s223_s1 + $0x18] sm:$0xff] }
   0x6   :  { %v97_v18 = vmul.f32 %v93_v13, %v93_v13  ;;  %v96_v19 = vsub.f32 %v88_v15, %v92_v16  ;;  %v99_v21 = vmul.f32 %v95_v17, %v95_v17 }
   0x7   :  { %v98_v20 = vmul.f32 %v94_v14, %v94_v14 }
   0x8   :  { %v100_v24 = vmul.f32 %v96_v19, %v96_v19 }
   0xa   :  { %122 = vperm.xlu1 %160, %v104_v3   ;;  %112 = vperm.xlu0 %159, %v102_v4  }
  0x74   :  { %v118_v9 = vpop.permute.xlu1 %117  ;;  %v108_v12 = vpop.permute.xlu0 %107 }
  0x75   :  { %v125_v23 = vmul.f32 %v108_v12, %v97_v18  ;;  %v127_v27 = vmul.f32 %v118_v9, %v99_v21 }
  0x7c   :  { %v113_v22 = vpop.permute.xlu0 %112  ;;  %v123_v26 = vpop.permute.xlu1 %122 }
  0x7d   :  { %v126_v25 = vmul.f32 %v113_v22, %v98_v20  ;;  %v128_v29 = vmul.f32 %v123_v26, %v100_v24 }
  0x7f   :  { %v129_v28 = vadd.f32 %v126_v25, %v125_v23 }
  0x81   :  { %v130_v30 = vadd.f32 %v129_v28, %v127_v27 }
  0x83   :  { %v131_v31 = vadd.f32 %v130_v30, %v128_v29 }
  0x85   :  { %134 = vst [vmem:[%s224_s3] sm:$0xff] %v131_v31 }

</bundles_post_ra>
